<compile_context>
chip_gen: v5e
topology: v5e:2x2
jax: 0.10.0
libtpu: 0.0.40
codegen_flags: <defaults>
</compile_context>

<pallas_src>
import numpy as np
import jax
import jax.numpy as jnp
from jax.experimental import pallas as pl
from jax.experimental.pallas import tpu as pltpu

A_PAD = 128  # padded action-lane width (lane-dense outputs)


# ---------------------------------------------------------------------------
# Parameter init (deterministic, mirrors torch orthogonal_ init + zero bias)
# ---------------------------------------------------------------------------
def orthogonal_init(key, in_features, out_features, std):
    """Orthogonal init like torch.nn.init.orthogonal_(weight, gain=std).

    torch Linear weight has shape [out, in]; we return the transpose
    [in, out] so the kernel computes x @ W.
    """
    a = jax.random.normal(key, (out_features, in_features), dtype=jnp.float32)
    transpose = out_features < in_features
    if transpose:
        a = a.T
    q, r = jnp.linalg.qr(a)
    d = jnp.sign(jnp.diagonal(r))
    q = q * d[None, :]
    if transpose:
        q = q.T
    w_out_in = std * q  # [out, in]
    return w_out_in.T.astype(jnp.float32)  # [in, out]


def make_params(key, hidden_size, actions_size):
    ks = jax.random.split(key, 5)
    std2 = float(np.sqrt(2.0))
    params = {
        # actor_mean
        "am_w1": orthogonal_init(ks[0], hidden_size, 128, std2),
        "am_b1": jnp.zeros((1, 128), jnp.float32),
        "am_w2": orthogonal_init(ks[1], 128, 128, std2),
        "am_b2": jnp.zeros((1, 128), jnp.float32),
        "am_w3": orthogonal_init(ks[2], 128, actions_size, 0.01),
        "am_b3": jnp.zeros((1, actions_size), jnp.float32),
        # log_std
        "ls_w1": orthogonal_init(ks[3], hidden_size, 128, std2),
        "ls_b1": jnp.zeros((1, 128), jnp.float32),
        "ls_w2": orthogonal_init(ks[4], 128, actions_size, 0.01),
        "ls_b2": jnp.zeros((1, actions_size), jnp.float32),
    }
    return params


# ---------------------------------------------------------------------------
# Fused-parameter preparation (done once in JAX, outside the kernel)
# ---------------------------------------------------------------------------
def fuse_params(params, initial_std=1.0):
    """Build the fused/padded weights the kernel consumes.

    Returns a dict with:
      w1_cat [H, 256], b1_cat [1, 256]          (layer-1 of both heads)
      am_w2  [128,128], am_b2 [1,128]           (actor_mean hidden layer)
      w3_blk [256, 2*A_PAD], b3_cat [1, 2*A_PAD] (block-diag final layers,
                                                  initial_std folded into bias)
    """
    H = params["am_w1"].shape[0]
    A = params["am_w3"].shape[1]
    f32 = jnp.float32

    w1_cat = jnp.concatenate([params["am_w1"], params["ls_w1"]], axis=1)  # [H, 256]
    b1_cat = jnp.concatenate([params["am_b1"], params["ls_b1"]], axis=1)  # [1, 256]

    # Pad final-layer weights/biases to A_PAD lanes (zeros in padded columns).
    am_w3_p = jnp.zeros((128, A_PAD), f32).at[:, :A].set(params["am_w3"])
    ls_w2_p = jnp.zeros((128, A_PAD), f32).at[:, :A].set(params["ls_w2"])

    # Block-diagonal final projection: [x || y] @ w3_blk = [mean || logstd].
    w3_blk = jnp.zeros((256, 2 * A_PAD), f32)
    w3_blk = w3_blk.at[:128, :A_PAD].set(am_w3_p)
    w3_blk = w3_blk.at[128:, A_PAD:].set(ls_w2_p)

    am_b3_p = jnp.zeros((1, A_PAD), f32).at[:, :A].set(params["am_b3"])
    # Fold initial_std: exp(logstd + log(initial_std)) == exp(logstd) * initial_std.
    ls_b2_shift = params["ls_b2"] + jnp.log(jnp.asarray(initial_std, f32))
    ls_b2_p = jnp.zeros((1, A_PAD), f32).at[:, :A].set(ls_b2_shift)
    b3_cat = jnp.concatenate([am_b3_p, ls_b2_p], axis=1)  # [1, 2*A_PAD]

    return {
        "w1_cat": w1_cat, "b1_cat": b1_cat,
        "am_w2": params["am_w2"], "am_b2": params["am_b2"],
        "w3_blk": w3_blk, "b3_cat": b3_cat,
        "H": H, "A": A,
    }


# ---------------------------------------------------------------------------
# Pallas kernel: whole forward (both heads) — 3 matmuls, lane-dense outputs
# ---------------------------------------------------------------------------
def _meta_actor_kernel(
    h_ref,            # [B, H]
    w1_ref, b1_ref,   # [H, 256], [1, 256]
    w2_ref, b2_ref,   # [128, 128], [1, 128]
    w3_ref, b3_ref,   # [256, 2*A_PAD], [1, 2*A_PAD]
    mean_ref,         # [B, A_PAD]
    std_ref,          # [B, A_PAD]
):
    h = h_ref[...]  # [B, H] f32

    # Layer 1 (both heads share LHS h): one [B,H]x[H,256] matmul.
    z = jnp.dot(h, w1_ref[...], preferred_element_type=jnp.float32) + b1_ref[...]
    z = jnp.tanh(z)
    x = z[:, :128]    # actor_mean branch (lane-aligned slice)
    y = z[:, 128:]    # log_std branch

    # actor_mean hidden layer.
    x = jnp.dot(x, w2_ref[...], preferred_element_type=jnp.float32) + b2_ref[...]
    x = jnp.tanh(x)

    # Final projections fused via block-diagonal weight: [x || y] @ W3_blk.
    xy = jnp.concatenate([x, y], axis=-1)  # [B, 256] (lane concat, no transpose)
    out = jnp.dot(xy, w3_ref[...], preferred_element_type=jnp.float32) + b3_ref[...]

    mean_ref[...] = out[:, :A_PAD]
    # initial_std already folded into the bias; exp runs on the (idle) EUP slot.
    std_ref[...] = jnp.exp(out[:, A_PAD:])


def meta_agent_actor_forward(hidden_state, params, initial_std=1.0):
    """hidden_state: [B, H] float32 -> (action_mean [B, A], action_std [B, A])."""
    B, H = hidden_state.shape
    fused = fuse_params(params, initial_std)
    A = fused["A"]

    full = lambda shape: pl.BlockSpec(shape, lambda: tuple(0 for _ in shape))

    in_specs = [
        full((B, H)),
        full((H, 256)), full((1, 256)),
        full((128, 128)), full((1, 128)),
        full((256, 2 * A_PAD)), full((1, 2 * A_PAD)),
    ]
    out_specs = (full((B, A_PAD)), full((B, A_PAD)))

    mean_pad, std_pad = pl.pallas_call(
        _meta_actor_kernel,
        out_shape=(
            jax.ShapeDtypeStruct((B, A_PAD), jnp.float32),
            jax.ShapeDtypeStruct((B, A_PAD), jnp.float32),
        ),
        grid=(),
        in_specs=in_specs,
        out_specs=out_specs,
    )(
        hidden_state,
        fused["w1_cat"], fused["b1_cat"],
        fused["am_w2"], fused["am_b2"],
        fused["w3_blk"], fused["b3_cat"],
    )
    # Slice the lane-dense slabs back down to the real action dimension.
    return mean_pad[:, :A], std_pad[:, :A]


# ---------------------------------------------------------------------------
# Pure-JAX reference for a correctness check
# ---------------------------------------------------------------------------
def reference_forward(hidden_state, params, initial_std=1.0):
    h = hidden_state
    x = jnp.tanh(h @ params["am_w1"] + params["am_b1"])
    x = jnp.tanh(x @ params["am_w2"] + params["am_b2"])
    mean = x @ params["am_w3"] + params["am_b3"]
    y = jnp.tanh(h @ params["ls_w1"] + params["ls_b1"])
    logstd = y @ params["ls_w2"] + params["ls_b2"]
    std = jnp.exp(logstd) * initial_std
    return mean, std


if __name__ == "__main__":
    hidden_size = 32
    actions_size = 8
    batch = 8
    initial_std = 1.0

    key = jax.random.PRNGKey(0)
    k_params, k_input = jax.random.split(key)

    params = make_params(k_params, hidden_size, actions_size)
    hidden_state = jax.random.normal(k_input, (batch, hidden_size), dtype=jnp.float32)

    mean, std = meta_agent_actor_forward(hidden_state, params, initial_std)
    jax.block_until_ready((mean, std))

    ref_mean, ref_std = reference_forward(hidden_state, params, initial_std)
    np.testing.assert_allclose(np.asarray(mean), np.asarray(ref_mean), rtol=1e-5, atol=1e-5)
    np.testing.assert_allclose(np.asarray(std), np.asarray(ref_std), rtol=1e-5, atol=1e-5)

    print("KERNEL_OK")
</pallas_src>

<mosaic_0001>
module attributes {stable_mosaic.version = 11 : i64} {
  func.func @_meta_actor_kernel(%arg0: memref<8x32xf32, #tpu.memory_space<vmem>>, %arg1: memref<32x256xf32, #tpu.memory_space<vmem>>, %arg2: memref<1x256xf32, #tpu.memory_space<vmem>>, %arg3: memref<128x128xf32, #tpu.memory_space<vmem>>, %arg4: memref<1x128xf32, #tpu.memory_space<vmem>>, %arg5: memref<256x256xf32, #tpu.memory_space<vmem>>, %arg6: memref<1x256xf32, #tpu.memory_space<vmem>>, %arg7: memref<8x128xf32, #tpu.memory_space<vmem>>, %arg8: memref<8x128xf32, #tpu.memory_space<vmem>>) attributes {dimension_semantics = [], scalar_prefetch = 0 : i64, scratch_operands = 0 : i64, tpu.core_type = #tpu.core_type<tc>} {
    %c0 = arith.constant 0 : index
    %c0_0 = arith.constant 0 : index
    %0 = vector.load %arg0[%c0, %c0_0] : memref<8x32xf32, #tpu.memory_space<vmem>>, vector<8x32xf32>
    %c0_1 = arith.constant 0 : index
    %c0_2 = arith.constant 0 : index
    %1 = vector.load %arg1[%c0_1, %c0_2] : memref<32x256xf32, #tpu.memory_space<vmem>>, vector<32x256xf32>
    %cst = arith.constant dense<0.000000e+00> : vector<8x256xf32>
    %2 = tpu.matmul %0, %1, %cst {dimension_numbers = #tpu.dot_dimension_numbers<[1], [0], [0], [1], [0, 0, 1, 1], [], []>} : vector<8x32xf32>, vector<32x256xf32>, vector<8x256xf32> -> vector<8x256xf32>
    %c0_3 = arith.constant 0 : index
    %c0_4 = arith.constant 0 : index
    %3 = vector.load %arg2[%c0_3, %c0_4] : memref<1x256xf32, #tpu.memory_space<vmem>>, vector<1x256xf32>
    %4 = vector.broadcast %3 : vector<1x256xf32> to vector<8x256xf32>
    %5 = arith.addf %2, %4 : vector<8x256xf32>
    %6 = math.tanh %5 : vector<8x256xf32>
    %7 = vector.extract_strided_slice %6 {offsets = [0, 0], sizes = [8, 128], strides = [1, 1]} : vector<8x256xf32> to vector<8x128xf32>
    %8 = vector.extract_strided_slice %6 {offsets = [0, 128], sizes = [8, 128], strides = [1, 1]} : vector<8x256xf32> to vector<8x128xf32>
    %c0_5 = arith.constant 0 : index
    %c0_6 = arith.constant 0 : index
    %9 = vector.load %arg3[%c0_5, %c0_6] : memref<128x128xf32, #tpu.memory_space<vmem>>, vector<128x128xf32>
    %cst_7 = arith.constant dense<0.000000e+00> : vector<8x128xf32>
    %10 = tpu.matmul %7, %9, %cst_7 {dimension_numbers = #tpu.dot_dimension_numbers<[1], [0], [0], [1], [0, 0, 1, 1], [], []>} : vector<8x128xf32>, vector<128x128xf32>, vector<8x128xf32> -> vector<8x128xf32>
    %c0_8 = arith.constant 0 : index
    %c0_9 = arith.constant 0 : index
    %11 = vector.load %arg4[%c0_8, %c0_9] : memref<1x128xf32, #tpu.memory_space<vmem>>, vector<1x128xf32>
    %12 = vector.broadcast %11 : vector<1x128xf32> to vector<8x128xf32>
    %13 = arith.addf %10, %12 : vector<8x128xf32>
    %14 = math.tanh %13 : vector<8x128xf32>
    %15 = tpu.concatenate %14, %8 in 1 : vector<8x128xf32>, vector<8x128xf32> -> vector<8x256xf32>
    %c0_10 = arith.constant 0 : index
    %c0_11 = arith.constant 0 : index
    %16 = vector.load %arg5[%c0_10, %c0_11] : memref<256x256xf32, #tpu.memory_space<vmem>>, vector<256x256xf32>
    %cst_12 = arith.constant dense<0.000000e+00> : vector<8x256xf32>
    %17 = tpu.matmul %15, %16, %cst_12 {dimension_numbers = #tpu.dot_dimension_numbers<[1], [0], [0], [1], [0, 0, 1, 1], [], []>} : vector<8x256xf32>, vector<256x256xf32>, vector<8x256xf32> -> vector<8x256xf32>
    %c0_13 = arith.constant 0 : index
    %c0_14 = arith.constant 0 : index
    %18 = vector.load %arg6[%c0_13, %c0_14] : memref<1x256xf32, #tpu.memory_space<vmem>>, vector<1x256xf32>
    %19 = vector.broadcast %18 : vector<1x256xf32> to vector<8x256xf32>
    %20 = arith.addf %17, %19 : vector<8x256xf32>
    %21 = vector.extract_strided_slice %20 {offsets = [0, 0], sizes = [8, 128], strides = [1, 1]} : vector<8x256xf32> to vector<8x128xf32>
    %c0_15 = arith.constant 0 : index
    %c0_16 = arith.constant 0 : index
    %22 = vector.load %arg7[%c0_15, %c0_16] : memref<8x128xf32, #tpu.memory_space<vmem>>, vector<8x128xf32>
    tpu.vector_store %arg7[%c0_15, %c0_16], %21 {strides = array<i32>} : memref<8x128xf32, #tpu.memory_space<vmem>>, vector<8x128xf32>,
    %23 = vector.extract_strided_slice %20 {offsets = [0, 128], sizes = [8, 128], strides = [1, 1]} : vector<8x256xf32> to vector<8x128xf32>
    %24 = math.exp %23 : vector<8x128xf32>
    %c0_17 = arith.constant 0 : index
    %c0_18 = arith.constant 0 : index
    %25 = vector.load %arg8[%c0_17, %c0_18] : memref<8x128xf32, #tpu.memory_space<vmem>>, vector<8x128xf32>
    tpu.vector_store %arg8[%c0_17, %c0_18], %24 {strides = array<i32>} : memref<8x128xf32, #tpu.memory_space<vmem>>, vector<8x128xf32>,
    return
  }
}

</mosaic_0001>

<bundles_post_ra>
// kernel: tpu_custom_call.1
= control target key start
LH: loop header
LB: loop body
LE: loop exit
PB: predicated region body
PF: predicated region fallthrough
CT: control target
= control target key end

     0   :  { %14 = vsyncpa [#allocation3], 0  ;;  %s686_s0 = inlined_call_operand.hbm [shape: f32[8,32], index: 0, kind: input, shape index: {}]   ;;  %s687_s1 = inlined_call_operand.hbm [shape: f32[32,256], index: 1, kind: input, shape index: {}]   ;;  %s688_s2 = inlined_call_operand.hbm [shape: f32[1,256], index: 2, kind: input, shape index: {}]   ;;  %s689_s3 = inlined_call_operand.hbm [shape: f32[128,128], index: 3, kind: input, shape index: {}]   ;;  %s690_s4 = inlined_call_operand.vmem [shape: f32[1,128], index: 4, kind: input, shape index: {}]   ;;  %s691_s5 = inlined_call_operand.hbm [shape: f32[256,256], index: 5, kind: input, shape index: {}]   ;;  %s692_s6 = inlined_call_operand.vmem [shape: f32[1,256], index: 6, kind: input, shape index: {}]   ;;  %s693_s7 = inlined_call_operand.hbm [shape: f32[8,128], index: 7, kind: output, shape index: {0}]   ;;  %s694_s8 = inlined_call_operand.hbm [shape: f32[8,128], index: 8, kind: output, shape index: {1}]  }
   0x1   :  { %15 = vsyncpa [#allocation6], 0 }
   0x2   :  { %16 = vsyncpa [#allocation9], 0 }
   0x3   :  { %17 = vsyncpa [#allocation4], 0  ;;  %s34_s29 = sshll.u32 %s687_s1, 4  ;;  %s35_s29 = int_to_ptr.hbm [resolvable:$true] %s34_s29 }
   0x4   :  { %18 = vsyncpa [#allocation13], 0  ;;  %s595_s30 = smov [#allocation5]   ;;  %s58_s12 = sshll.u32 %s689_s3, 4  ;;  %s59_s12 = int_to_ptr.hbm [resolvable:$true] %s58_s12 }
   0x5   :  { %s36_s9 = sshll.u32 %s595_s30, 4  ;;  %s596_s13 = smov 256   ;;  %s37_s9 = int_to_ptr.vmem [resolvable:$true] %s36_s9 }
   0x6   :  { %s597_s14 = smov 16   ;;  %s598_s15 = smov [#allocation8]  }
   0x7   :  { %42 = dma.hbm_to_vmem [thread:$0]  %s35_s29, 1024, %s37_s9, [#allocation6], %s596_s13, %s596_s13, %s597_s14  }
   0x8   :  { %s60_s16 = sshll.u32 %s598_s15, 4  ;;  %s599_s1 = smov 128   ;;  %s61_s16 = int_to_ptr.vmem [resolvable:$true] %s60_s16 }
   0x9   :  { %s600_s17 = smov 8   ;;  %s24_s20 = sshll.u32 %s686_s0, 4  ;;  %s25_s20 = int_to_ptr.hbm [resolvable:$true] %s24_s20 }
   0xa   :  { %66 = dma.hbm_to_vmem [thread:$0]  %s59_s12, 2048, %s61_s16, [#allocation9], %s599_s1, %s599_s1, %s600_s17  }
   0xb   :  { %s601_s21 = smov [#allocation2]   ;;  %s48_s24 = sshll.u32 %s688_s2, 4  ;;  %s49_s24 = int_to_ptr.hbm [resolvable:$true] %s48_s24 }
   0xc   :  { %s26_s3 = sshll.u32 %s601_s21, 4  ;;  %s602_s25 = smov [#allocation7]   ;;  %s27_s3 = int_to_ptr.vmem [resolvable:$true] %s26_s3 }
   0xd   :  { %29 = dma.hbm_to_vmem [thread:$0]  %s25_s20, 128, %s27_s3, [#allocation3]  }
   0xe   :  { %s50_s26 = sshll.u32 %s602_s25, 4  ;;  %s73_s29 = sshll.u32 %s691_s5, 4  ;;  %s51_s26 = int_to_ptr.vmem [resolvable:$true] %s50_s26  ;;  %s74_s29 = int_to_ptr.hbm [resolvable:$true] %s73_s29 }
   0xf   :  { %53 = dma.hbm_to_vmem [thread:$0]  %s49_s24, 32, %s51_s26, [#allocation6]  }
  0x10   :  { %s603_s0 = smov [#allocation10]  }
  0x11   :  { %s75_s30 = sshll.u32 %s603_s0, 4  ;;  %s76_s30 = int_to_ptr.vmem [resolvable:$true] %s75_s30 }
  0x12   :  { %81 = dma.hbm_to_vmem [thread:$0]  %s74_s29, 8192, %s76_s30, [#allocation9], %s596_s13, %s596_s13, %s597_s14  }
  0x13   :  { %585 = dma.done.wait [#allocation3], 128  }
  0x14   :  { %586 = vsyncadd [#allocation3], 4294967168 }
  0x15   :  { %587 = dma.done.wait [#allocation6], 1056  }
  0x16   :  { %588 = vsyncadd [#allocation6], 4294966240 }
  0x17   :  { %589 = dma.done.wait [#allocation9], 10240  }
  0x18   :  { %590 = vsyncadd [#allocation9], 4294957056  ;;  %v111_v0 = vld [vmem:[#allocation5 + $0x30] sm:$0xff]  ;;  %v109_v1 = vld [vmem:[#allocation5 + $0x20] sm:$0xff]  ;;  %vm119_vm0 = vcmask 261120   ;;  %s604_s11 = smov [#allocation11]  }
  0x19   :  { %135 = vmatpush.msra.mxu0 %v111_v0  ;;  %v180_v2 = vld [vmem:[#allocation8 + $0x78] sm:$0xff]  ;;  %v107_v3 = vld [vmem:[#allocation5 + $0x10] sm:$0xff]  ;;  %v177_v8 = vld [vmem:[#allocation8 + $0x60] sm:$0xff]  ;;  %s367_s14 = sshll.u32 %s693_s7, 4  ;;  %s605_s15 = smov [#allocation12]   ;;  %s368_s14 = int_to_ptr.hbm [resolvable:$true] %s367_s14 }
  0x1a   :  { %185 = vmatpush.msra.mxu2 %v180_v2  ;;  %v179_v4 = vld [vmem:[#allocation8 + $0x70] sm:$0xff]  ;;  %v178_v5 = vld [vmem:[#allocation8 + $0x68] sm:$0xff]  ;;  %v105_v6 = vld [vmem:[#allocation5] sm:$0xff]  ;;  %s376_s16 = sshll.u32 %s605_s15, 4  ;;  %s378_s17 = sshll.u32 %s694_s8, 4  ;;  %s377_s16 = int_to_ptr.vmem [resolvable:$true] %s376_s16  ;;  %s379_s17 = int_to_ptr.hbm [resolvable:$true] %s378_s17 }
  0x1b   :  { %136 = vmatpush.msra.mxu0 %v109_v1  ;;  %v104_v7 = vld [vmem:[#allocation2] sm:$0xff]  ;;  %v174_v11 = vld [vmem:[#allocation8 + $0x48] sm:$0xff]  ;;  %v173_v12 = vld [vmem:[#allocation8 + $0x40] sm:$0xff] }
  0x1c   :  { %186 = vmatpush.msra.mxu2 %v179_v4  ;;  %v176_v9 = vld [vmem:[#allocation8 + $0x58] sm:$0xff]  ;;  %v175_v10 = vld [vmem:[#allocation8 + $0x50] sm:$0xff]  ;;  %v170_v15 = vld [vmem:[#allocation8 + $0x28] sm:$0xff] }
  0x1d   :  { %137 = vmatpush.msra.mxu0 %v107_v3  ;;  %v172_v13 = vld [vmem:[#allocation8 + $0x38] sm:$0xff]  ;;  %v171_v14 = vld [vmem:[#allocation8 + $0x30] sm:$0xff]  ;;  %v169_v16 = vld [vmem:[#allocation8 + $0x20] sm:$0xff] }
  0x1e   :  { %187 = vmatpush.msra.mxu2 %v178_v5  ;;  %v168_v17 = vld [vmem:[#allocation8 + $0x18] sm:$0xff]  ;;  %v167_v19 = vld [vmem:[#allocation8 + $0x10] sm:$0xff]  ;;  %v110_v20 = vld [vmem:[#allocation5 + $0x28] sm:$0xff] }
  0x1f   :  { %138 = vmatpush.msra.mxu0 %v105_v6  ;;  %v112_v18 = vld [vmem:[#allocation5 + $0x38] sm:$0xff]  ;;  %v166_v21 = vld [vmem:[#allocation8 + $0x8] sm:$0xff]  ;;  %v165_v23 = vld [vmem:[#allocation8] sm:$0xff] }
  0x20   :  { %395 = vmatmul.msk.f32.vlgmr.msra.gmra.mxu0 %vm119_vm0, %v104_v7  ;;  %188 = vmatpush.msra.mxu2 %v177_v8  ;;  %v108_v22 = vld [vmem:[#allocation5 + $0x18] sm:$0xff]  ;;  %v106_v24 = vld [vmem:[#allocation5 + $0x8] sm:$0xff]  ;;  %v113_v59 = vld [vmem:[#allocation7] sm:$0x3] }
  0x21   :  { %155 = vmatpush.msra.mxu1 %v112_v18  ;;  %v268_v25 = vld [vmem:[#allocation10 + $0x1f0] sm:$0xff]  ;;  %v269_v26 = vld [vmem:[#allocation10 + $0x1f8] sm:$0xff]  ;;  %v266_v27 = vld [vmem:[#allocation10 + $0x1e0] sm:$0xff]  ;;  %v115_v1 = vperm.slane %v113_v59, 0 }
  0x22   :  { %189 = vmatpush.msra.mxu2 %v176_v9  ;;  %296 = vmatpush.msrb.mxu0 %v268_v25  ;;  %v267_v28 = vld [vmem:[#allocation10 + $0x1e8] sm:$0xff]  ;;  %v236_v29 = vld [vmem:[#allocation10 + $0xf0] sm:$0xff]  ;;  %v237_v31 = vld [vmem:[#allocation10 + $0xf8] sm:$0xff] }
  0x23   :  { %156 = vmatpush.msra.mxu1 %v110_v20  ;;  %v264_v30 = vld [vmem:[#allocation10 + $0x1d0] sm:$0xff]  ;;  %276 = vmatpush.msra.mxu3 %v236_v29  ;;  %v265_v32 = vld [vmem:[#allocation10 + $0x1d8] sm:$0xff]  ;;  %v234_v33 = vld [vmem:[#allocation10 + $0xe0] sm:$0xff] }
  0x24   :  { %190 = vmatpush.msra.mxu2 %v175_v10  ;;  %297 = vmatpush.msrb.mxu0 %v266_v27  ;;  %v235_v34 = vld [vmem:[#allocation10 + $0xe8] sm:$0xff]  ;;  %v262_v35 = vld [vmem:[#allocation10 + $0x1c0] sm:$0xff]  ;;  %v232_v36 = vld [vmem:[#allocation10 + $0xd0] sm:$0xff] }
  0x25   :  { %157 = vmatpush.msra.mxu1 %v108_v22  ;;  %277 = vmatpush.msra.mxu3 %v234_v33  ;;  %v263_v37 = vld [vmem:[#allocation10 + $0x1c8] sm:$0xff]  ;;  %v233_v38 = vld [vmem:[#allocation10 + $0xd8] sm:$0xff]  ;;  %v260_v39 = vld [vmem:[#allocation10 + $0x1b0] sm:$0xff] }
  0x26   :  { %191 = vmatpush.msra.mxu2 %v174_v11  ;;  %298 = vmatpush.msrb.mxu0 %v264_v30  ;;  %v230_v40 = vld [vmem:[#allocation10 + $0xc0] sm:$0xff]  ;;  %v261_v41 = vld [vmem:[#allocation10 + $0x1b8] sm:$0xff]  ;;  %v231_v42 = vld [vmem:[#allocation10 + $0xc8] sm:$0xff] }
  0x27   :  { %158 = vmatpush.msra.mxu1 %v106_v24  ;;  %278 = vmatpush.msra.mxu3 %v232_v36  ;;  %v258_v43 = vld [vmem:[#allocation10 + $0x1a0] sm:$0xff]  ;;  %v228_v44 = vld [vmem:[#allocation10 + $0xb0] sm:$0xff]  ;;  %v259_v45 = vld [vmem:[#allocation10 + $0x1a8] sm:$0xff] }
  0x28   :  { %192 = vmatpush.msra.mxu2 %v173_v12  ;;  %396 = vmatmul.msk.f32.vlgmr.msra.gmra.mxu1 %vm119_vm0, %v104_v7  ;;  %v229_v46 = vld [vmem:[#allocation10 + $0xb8] sm:$0xff]  ;;  %v256_v47 = vld [vmem:[#allocation10 + $0x190] sm:$0xff]  ;;  %v226_v48 = vld [vmem:[#allocation10 + $0xa0] sm:$0xff] }
  0x29   :  { %316 = vmatpush.msrb.mxu1 %v237_v31  ;;  %299 = vmatpush.msrb.mxu0 %v262_v35  ;;  %v257_v49 = vld [vmem:[#allocation10 + $0x198] sm:$0xff]  ;;  %v227_v50 = vld [vmem:[#allocation10 + $0xa8] sm:$0xff]  ;;  %v254_v51 = vld [vmem:[#allocation10 + $0x180] sm:$0xff] }
  0x2a   :  { %193 = vmatpush.msra.mxu2 %v172_v13  ;;  %279 = vmatpush.msra.mxu3 %v230_v40  ;;  %v224_v52 = vld [vmem:[#allocation10 + $0x90] sm:$0xff]  ;;  %v255_v53 = vld [vmem:[#allocation10 + $0x188] sm:$0xff]  ;;  %v225_v54 = vld [vmem:[#allocation10 + $0x98] sm:$0xff] }
  0x2b   :  { %317 = vmatpush.msrb.mxu1 %v235_v34  ;;  %300 = vmatpush.msrb.mxu0 %v260_v39  ;;  %v252_v55 = vld [vmem:[#allocation10 + $0x170] sm:$0xff]  ;;  %v222_v56 = vld [vmem:[#allocation10 + $0x80] sm:$0xff]  ;;  %v253_v57 = vld [vmem:[#allocation10 + $0x178] sm:$0xff] }
  0x2c   :  { %194 = vmatpush.msra.mxu2 %v171_v14  ;;  %280 = vmatpush.msra.mxu3 %v228_v44  ;;  %v223_v58 = vld [vmem:[#allocation10 + $0x88] sm:$0xff]  ;;  %v250_v60 = vld [vmem:[#allocation10 + $0x160] sm:$0xff]  ;;  %v220_v61 = vld [vmem:[#allocation10 + $0x70] sm:$0xff]  ;;  %v116_v14 = vperm.slane %v113_v59, 1 }
  0x2d   :  { %318 = vmatpush.msrb.mxu1 %v233_v38  ;;  %301 = vmatpush.msrb.mxu0 %v258_v43  ;;  %v251_v62 = vld [vmem:[#allocation10 + $0x168] sm:$0xff]  ;;  %v221_v63 = vld [vmem:[#allocation10 + $0x78] sm:$0xff]  ;;  %v248_v0 = vld [vmem:[#allocation10 + $0x150] sm:$0xff] }
  0x2e   :  { %195 = vmatpush.msra.mxu2 %v170_v15  ;;  %281 = vmatpush.msra.mxu3 %v226_v48  ;;  %v249_v2 = vld [vmem:[#allocation10 + $0x158] sm:$0xff]  ;;  %v218_v6 = vld [vmem:[#allocation10 + $0x60] sm:$0xff]  ;;  %v219_v8 = vld [vmem:[#allocation10 + $0x68] sm:$0xff] }
  0x2f   :  { %319 = vmatpush.msrb.mxu1 %v231_v42  ;;  %302 = vmatpush.msrb.mxu0 %v256_v47  ;;  %v246_v7 = vld [vmem:[#allocation10 + $0x140] sm:$0xff]  ;;  %v247_v9 = vld [vmem:[#allocation10 + $0x148] sm:$0xff]  ;;  %v216_v10 = vld [vmem:[#allocation10 + $0x50] sm:$0xff] }
  0x30   :  { %196 = vmatpush.msra.mxu2 %v169_v16  ;;  %282 = vmatpush.msra.mxu3 %v224_v52  ;;  %v244_v11 = vld [vmem:[#allocation10 + $0x130] sm:$0xff]  ;;  %v217_v12 = vld [vmem:[#allocation10 + $0x58] sm:$0xff]  ;;  %v242_v18 = vld [vmem:[#allocation10 + $0x120] sm:$0xff] }
  0x31   :  { %320 = vmatpush.msrb.mxu1 %v229_v46  ;;  %303 = vmatpush.msrb.mxu0 %v254_v51  ;;  %v245_v13 = vld [vmem:[#allocation10 + $0x138] sm:$0xff]  ;;  %v243_v20 = vld [vmem:[#allocation10 + $0x128] sm:$0xff]  ;;  %v240_v22 = vld [vmem:[#allocation10 + $0x110] sm:$0xff] }
  0x32   :  { %197 = vmatpush.msra.mxu2 %v168_v17  ;;  %283 = vmatpush.msra.mxu3 %v222_v56  ;;  %v214_v17 = vld [vmem:[#allocation10 + $0x40] sm:$0xff]  ;;  %v241_v24 = vld [vmem:[#allocation10 + $0x118] sm:$0xff]  ;;  %v211_v27 = vld [vmem:[#allocation10 + $0x28] sm:$0xff] }
  0x33   :  { %321 = vmatpush.msrb.mxu1 %v227_v50  ;;  %304 = vmatpush.msrb.mxu0 %v252_v55  ;;  %v210_v25 = vld [vmem:[#allocation10 + $0x20] sm:$0xff]  ;;  %v208_v30 = vld [vmem:[#allocation10 + $0x10] sm:$0xff]  ;;  %v209_v31 = vld [vmem:[#allocation10 + $0x18] sm:$0xff] }
  0x34   :  { %198 = vmatpush.msra.mxu2 %v167_v19  ;;  %284 = vmatpush.msra.mxu3 %v220_v61  ;;  %v215_v19 = vld [vmem:[#allocation10 + $0x48] sm:$0xff]  ;;  %v408_v34 = vld [vmem:[%s690_s4] ss:$0 sm:$0xff]  ;;  %s365_s4 = sshll.u32 %s604_s11, 4  ;;  %s366_s4 = int_to_ptr.vmem [resolvable:$true] %s365_s4 }
  0x35   :  { %322 = vmatpush.msrb.mxu1 %v225_v54  ;;  %305 = vmatpush.msrb.mxu0 %v250_v60  ;;  %v207_v33 = vld [vmem:[#allocation10 + $0x8] sm:$0xff]  ;;  %v270_v38 = vld [vmem:[%s692_s6] sm:$0x3] }
  0x36   :  { %199 = vmatpush.msra.mxu2 %v166_v21  ;;  %285 = vmatpush.msra.mxu3 %v218_v6  ;;  %v212_v21 = vld [vmem:[#allocation10 + $0x30] sm:$0xff]  ;;  %v273_v39 = vperm.slane %v270_v38, 1  ;;  %v272_v44 = vperm.slane %v270_v38, 0 }
  0x37   :  { %323 = vmatpush.msrb.mxu1 %v223_v58  ;;  %306 = vmatpush.msrb.mxu0 %v248_v0 }
  0x38   :  { %200 = vmatpush.msra.mxu2 %v165_v23  ;;  %286 = vmatpush.msra.mxu3 %v216_v10  ;;  %v213_v23 = vld [vmem:[#allocation10 + $0x38] sm:$0xff] }
  0x39   :  { %324 = vmatpush.msrb.mxu1 %v221_v63  ;;  %307 = vmatpush.msrb.mxu0 %v246_v7 }
  0x3a   :  { %336 = vmatpush.msrb.mxu2 %v269_v26  ;;  %287 = vmatpush.msra.mxu3 %v214_v17  ;;  %v238_v26 = vld [vmem:[#allocation10 + $0x100] sm:$0xff] }
  0x3b   :  { %325 = vmatpush.msrb.mxu1 %v219_v8  ;;  %308 = vmatpush.msrb.mxu0 %v244_v11 }
  0x3c   :  { %337 = vmatpush.msrb.mxu2 %v267_v28  ;;  %288 = vmatpush.msra.mxu3 %v212_v21  ;;  %v239_v28 = vld [vmem:[#allocation10 + $0x108] sm:$0xff] }
  0x3d   :  { %326 = vmatpush.msrb.mxu1 %v217_v12  ;;  %309 = vmatpush.msrb.mxu0 %v242_v18 }
  0x3e   :  { %338 = vmatpush.msrb.mxu2 %v265_v32  ;;  %289 = vmatpush.msra.mxu3 %v210_v25  ;;  %v206_v32 = vld [vmem:[#allocation10] sm:$0xff] }
  0x3f   :  { %327 = vmatpush.msrb.mxu1 %v215_v19  ;;  %310 = vmatpush.msrb.mxu0 %v240_v22 }
  0x40   :  { %339 = vmatpush.msrb.mxu2 %v263_v37  ;;  %290 = vmatpush.msra.mxu3 %v208_v30 }
  0x41   :  { %328 = vmatpush.msrb.mxu1 %v213_v23  ;;  %311 = vmatpush.msrb.mxu0 %v238_v26 }
  0x42   :  { %340 = vmatpush.msrb.mxu2 %v261_v41  ;;  %291 = vmatpush.msra.mxu3 %v206_v32 }
  0x43   :  { %329 = vmatpush.msrb.mxu1 %v211_v27 }
  0x44   :  { %341 = vmatpush.msrb.mxu2 %v259_v45 }
  0x45   :  { %330 = vmatpush.msrb.mxu1 %v209_v31 }
  0x46   :  { %342 = vmatpush.msrb.mxu2 %v257_v49 }
  0x47   :  { %331 = vmatpush.msrb.mxu1 %v207_v33 }
  0x48   :  { %343 = vmatpush.msrb.mxu2 %v255_v53 }
  0x4a   :  { %344 = vmatpush.msrb.mxu2 %v253_v57 }
  0x4c   :  { %345 = vmatpush.msrb.mxu2 %v251_v62 }
  0x4e   :  { %346 = vmatpush.msrb.mxu2 %v249_v2 }
  0x50   :  { %347 = vmatpush.msrb.mxu2 %v247_v9 }
  0x52   :  { %348 = vmatpush.msrb.mxu2 %v245_v13 }
  0x54   :  { %349 = vmatpush.msrb.mxu2 %v243_v20 }
  0x56   :  { %350 = vmatpush.msrb.mxu2 %v241_v24 }
  0x58   :  { %351 = vmatpush.msrb.mxu2 %v239_v28 }
  0x9d   :  { %v140_v3 = vpop.f32.mrf.mxu0 }
  0x9e   :  { %v141_v4 = vadd.f32 %v140_v3, %v115_v1 }
  0xa0   :  { %409 = vtanh.f32 %v141_v4 }
  0xa5   :  { %v160_v15 = vpop.f32.mrf.mxu1 }
  0xa6   :  { %v410_v5 = vpop.eup %409  ;;  %v161_v16 = vadd.f32 %v160_v15, %v116_v14 }
  0xa7   :  { %201 = vmatmul.f32.vlgmr.msra.gmra.mxu2 %v410_v5 }
  0xa8   :  { %411 = vtanh.f32 %v161_v16 }
  0xae   :  { %v412_v29 = vpop.eup %411 }
  0xaf   :  { %312 = vmatmul.f32.vlgmr.msrb.gmra.mxu0 %v412_v29  ;;  %352 = vmatmul.f32.vlgmr.msrb.gmra.mxu2 %v412_v29 }
 0x12a   :  { %v202_v35 = vpop.f32.mrf.mxu2 }
 0x12b   :  { %v203_v36 = vadd.f32 %v408_v34, %v202_v35 }
 0x12c   :  { %v313_v48 = vpop.f32.mrf.mxu0 }
 0x12d   :  { %413 = vtanh.f32 %v203_v36 }
 0x132   :  { %v353_v41 = vpop.f32.mrf.mxu2 }
 0x133   :  { %v414_v37 = vpop.eup %413 }
 0x134   :  { %292 = vmatmul.f32.vlgmr.msra.gmra.mxu3 %v414_v37  ;;  %332 = vmatmul.f32.vlgmr.msrb.gmra.mxu1 %v414_v37 }
 0x1b1   :  { %v333_v40 = vpop.f32.mrf.mxu1 }
 0x1b2   :  { %v334_v42 = vadd.f32 %v333_v40, %v273_v39 }
 0x1b4   :  { %v354_v43 = vadd.f32 %v353_v41, %v334_v42 }
 0x1b6   :  { %v357_v45 = vmul.f32 1.442695, %v354_v43 }
 0x1b7   :  { %v293_v46 = vpop.f32.mrf.mxu3 }
 0x1b8   :  { %415 = vpow2.f32 %v357_v45  ;;  %v294_v47 = vadd.f32 %v293_v46, %v272_v44 }
 0x1ba   :  { %v314_v49 = vadd.f32 %v313_v48, %v294_v47 }
 0x1bc   :  { %356 = vst [vmem:[#allocation11] sm:$0xff] %v314_v49 }
 0x1bd   :  { %370 = dma.vmem_to_hbm [thread:$0]  %s366_s4, 128, %s368_s14, [#allocation4]  }
 0x1be   :  { %v416_v50 = vpop.eup %415 }
 0x1bf   :  { %359 = vst [vmem:[#allocation12] sm:$0xff] %v416_v50 }
 0x1c0   :  { %381 = dma.vmem_to_hbm [thread:$0]  %s377_s16, 128, %s379_s17, [#allocation13]  }
 0x1c1   :  { %591 = dma.done.wait [#allocation4], 128  }
 0x1c2   :  { %592 = vsyncadd [#allocation4], 4294967168 }
 0x1c3   :  { %593 = dma.done.wait [#allocation13], 128  }
 0x1c4   :  { %594 = vsyncadd [#allocation13], 4294967168 }
 0x1c5   :  { %390 = vsyncpa [#allocation3], 1 }
 0x1c6   :  { %391 = vsyncpa [#allocation6], 1 }
 0x1c7   :  { %392 = vsyncpa [#allocation9], 1 }
 0x1c8   :  { %393 = vsyncpa [#allocation4], 1 }
 0x1c9   :  { %394 = vsyncpa [#allocation13], 1 }

</bundles_post_ra>
